<compile_context>
chip_gen: v7x
topology: tpu7x:2x2x1
jax: 0.10.0
libtpu: 0.0.40
codegen_flags: <defaults>
</compile_context>

<pallas_src>
import jax
import jax.numpy as jnp
from jax import lax
from jax.experimental import pallas as pl
from jax.experimental.pallas import tpu as pltpu

TEMPERATURE = 0.07
EPS = 1e-8  # matches torch.nn.CosineSimilarity eps


def _round_up(x, m):
    return (x + m - 1) // m * m


def _choose_tiles(two_n, tm, tk):
    """Clamp / align tiles; force tk | tm so a single pad length covers both."""
    # Cap tm so there are >= 2 row tiles when possible (row axis is "parallel": v7x 2 TCs).
    cap = _round_up(max(two_n // 2, 1), 8)
    tm = max(8, min(_round_up(tm, 8), cap))
    tk = max(8, min(_round_up(tk, 8), tm))
    while tm % tk:            # tm, tk multiples of 8 -> terminates (worst case tk = 8)
        tk -= 8
    two_np = _round_up(two_n, tm)
    return tm, tk, two_np


def _vmem_limit_bytes(tm, tk, hp, bytes_cd):
    """Actual requirement + headroom; never request the whole v7x 64 MiB per-core budget."""
    need = (2 * (tm + tk) * hp * bytes_cd   # double-buffered Q / K input tiles
            + 8 * tm * tk * 4               # s / exp / mask temporaries (generous)
            + 16 * tm * 4)                  # m / l scratch + per-row output
    return int(min(max(need, 32 * 1024 * 1024), 48 * 1024 * 1024))


def _make_kernel(tm, tk, two_n, inv_t, has_pad):
    """Build the tiled streaming-LSE kernel (only Python scalars baked into the closure)."""
    mask_val = -1e30  # finite "-inf": exp(mask_val - m) underflows to 0 vs. any real logit

    def kernel(q_ref, k_ref, o_ref, m_ref, l_ref):
        r = pl.program_id(0)          # row tile (parallel)
        c = pl.program_id(1)          # col tile (arbitrary / reduction, innermost)
        n_col = pl.num_programs(1)

        @pl.when(c == 0)
        def _():
            m_ref[...] = jnp.full_like(m_ref, -jnp.inf)
            l_ref[...] = jnp.zeros_like(l_ref)

        # Gram tile on the MXU: rows are pre-normalized; contract lane dims (no transpose).
        s = lax.dot_general(q_ref[...], k_ref[...], (((1,), (1,)), ((), ())),
                            preferred_element_type=jnp.float32) * inv_t   # (tm, tk) f32

        def lse_update(logits):
            m_prev = m_ref[...]
            m_new = jnp.maximum(m_prev, jnp.max(logits, axis=-1, keepdims=True))
            l_ref[...] = (l_ref[...] * jnp.exp(m_prev - m_new)
                          + jnp.sum(jnp.exp(logits - m_new), axis=-1, keepdims=True))
            m_ref[...] = m_new

        row0 = r * tm
        col0 = c * tk
        crosses_diag = jnp.logical_and(col0 < row0 + tm, row0 < col0 + tk)
        if has_pad:                                    # static (Python) gate
            needs_mask = jnp.logical_or(crosses_diag, col0 + tk > two_n)
        else:
            needs_mask = crosses_diag

        @pl.when(jnp.logical_not(needs_mask))
        def _():                                       # steady state: no mask work at all
            lse_update(s)

        @pl.when(needs_mask)
        def _():                                       # diagonal-crossing / padded-tail tiles
            li = lax.broadcasted_iota(jnp.int32, (tm, tk), 0)
            lj = lax.broadcasted_iota(jnp.int32, (tm, tk), 1)
            mask = (li - lj) == (col0 - row0)          # global row == global col (self-sim)
            if has_pad:
                mask = jnp.logical_or(mask, (col0 + lj) >= two_n)
            lse_update(jnp.where(mask, mask_val, s))

        @pl.when(c == n_col - 1)
        def _():
            o_ref[...] = m_ref[...] + jnp.log(l_ref[...])

    return kernel


def infonce_loss(z_i, z_j, *, temperature=TEMPERATURE, tm=512, tk=512,
                 use_bf16_matmul=True):
    """z_i, z_j: (N, H) embeddings of the two augmented views. Returns scalar loss."""
    n, h = z_i.shape
    assert z_j.shape == (n, h)
    two_n = 2 * n

    z = jnp.concatenate([z_i, z_j], axis=0).astype(jnp.float32)          # (2N, H)
    partner = jnp.concatenate([z_j, z_i], axis=0).astype(jnp.float32)    # z[(i+N)%2N]

    # Positive logit in f32 from the unnormalized embeddings (torch-exact pairwise clamp).
    zsq = jnp.sum(z * z, axis=-1)
    psq = jnp.sum(partner * partner, axis=-1)
    pos = (jnp.sum(z * partner, axis=-1)
           / jnp.maximum(jnp.sqrt(zsq * psq), EPS)) / temperature        # (2N,)

    # L2-normalize rows once; stream in the compute dtype (bf16 default -> native MXU).
    # Row-wise clamp max(||z||, EPS) == torch's pairwise clamp for non-degenerate inputs.
    inv_norm = lax.rsqrt(jnp.maximum(zsq, EPS * EPS))[:, None]
    compute_dtype = jnp.bfloat16 if use_bf16_matmul else jnp.float32
    zn = (z * inv_norm).astype(compute_dtype)

    hp = _round_up(h, 128)
    tm, tk, two_np = _choose_tiles(two_n, tm, tk)
    pad_r, pad_h = two_np - two_n, hp - h
    if pad_r or pad_h:                    # zero pad: zero rows/cols can't affect real dots
        zn = jnp.pad(zn, ((0, pad_r), (0, pad_h)))

    n_row, n_col = two_np // tm, two_np // tk
    kernel = _make_kernel(tm, tk, two_n, 1.0 / temperature, pad_r > 0)

    grid_spec = pltpu.PrefetchScalarGridSpec(
        num_scalar_prefetch=0,
        grid=(n_row, n_col),
        in_specs=[
            pl.BlockSpec((tm, hp), lambda r, c: (r, 0)),   # Q rows (resident per row tile)
            pl.BlockSpec((tk, hp), lambda r, c: (c, 0)),   # K rows (streamed, double-buffered)
        ],
        out_specs=pl.BlockSpec((tm, 1), lambda r, c: (r, 0)),
        scratch_shapes=[
            pltpu.VMEM((tm, 1), jnp.float32),   # running max
            pltpu.VMEM((tm, 1), jnp.float32),   # running sum
        ],
    )

    bytes_cd = 2 if use_bf16_matmul else 4
    lse = pl.pallas_call(
        kernel,
        out_shape=jax.ShapeDtypeStruct((two_np, 1), jnp.float32),
        grid_spec=grid_spec,
        compiler_params=pltpu.CompilerParams(
            dimension_semantics=("parallel", "arbitrary"),
            vmem_limit_bytes=_vmem_limit_bytes(tm, tk, hp, bytes_cd),
        ),
    )(zn, zn)

    # mean over the 2N real rows (padded rows are sliced off)
    return jnp.sum(lse[:two_n, 0] - pos) / two_n


def infonce_loss_ref(z_i, z_j, *, temperature=TEMPERATURE):
    """Pure-JAX reference mirroring the PyTorch module, for sanity checks."""
    z = jnp.concatenate([z_i, z_j], axis=0).astype(jnp.float32)
    two_n = z.shape[0]
    n = two_n // 2
    norm = jnp.linalg.norm(z, axis=-1, keepdims=True)
    sims = (z @ z.T) / jnp.maximum(norm * norm.T, EPS) / temperature
    idx = jnp.arange(two_n)
    pos = sims[idx, (idx + n) % two_n]
    masked = jnp.where(idx[:, None] == idx[None, :], -jnp.inf, sims)
    lse = jax.scipy.special.logsumexp(masked, axis=-1)
    return jnp.mean(lse - pos)


if __name__ == "__main__":
    key = jax.random.PRNGKey(0)
    k1, k2, k3, k4, k5, k6 = jax.random.split(key, 6)

    # Small shapes consistent with the module's forward: (batch, hidden) view embeddings.
    z_i = jax.random.normal(k1, (8, 32), dtype=jnp.float32)
    z_j = jax.random.normal(k2, (8, 32), dtype=jnp.float32)
    ref1 = jax.block_until_ready(infonce_loss_ref(z_i, z_j))
    out1_f32 = jax.block_until_ready(infonce_loss(z_i, z_j, use_bf16_matmul=False))
    assert jnp.allclose(out1_f32, ref1, atol=1e-3, rtol=1e-3), (out1_f32, ref1)
    out1_bf16 = jax.block_until_ready(infonce_loss(z_i, z_j))      # default bf16 MXU path
    assert jnp.allclose(out1_bf16, ref1, atol=1e-1, rtol=5e-2), (out1_bf16, ref1)

    # Multi-tile grid (4x4): diagonal-crossing tiles, mask-free tiles, padded last col tile.
    w_i = jax.random.normal(k3, (100, 48), dtype=jnp.float32)
    w_j = jax.random.normal(k4, (100, 48), dtype=jnp.float32)
    ref2 = jax.block_until_ready(infonce_loss_ref(w_i, w_j))
    out2_f32 = jax.block_until_ready(
        infonce_loss(w_i, w_j, tm=64, tk=64, use_bf16_matmul=False))
    assert jnp.allclose(out2_f32, ref2, atol=1e-3, rtol=1e-3), (out2_f32, ref2)
    out2_bf16 = jax.block_until_ready(infonce_loss(w_i, w_j, tm=64, tk=64))
    assert jnp.allclose(out2_bf16, ref2, atol=1e-1, rtol=5e-2), (out2_bf16, ref2)

    # tm > tk with row padding > tk: exercises fully padded column tiles (finite mask path).
    v_i = jax.random.normal(k5, (150, 48), dtype=jnp.float32)
    v_j = jax.random.normal(k6, (150, 48), dtype=jnp.float32)
    ref3 = jax.block_until_ready(infonce_loss_ref(v_i, v_j))
    out3 = jax.block_until_ready(
        infonce_loss(v_i, v_j, tm=96, tk=32, use_bf16_matmul=False))
    assert jnp.allclose(out3, ref3, atol=1e-3, rtol=1e-3), (out3, ref3)

    print("KERNEL_OK")
</pallas_src>

<mosaic_0001>
module attributes {stable_mosaic.version = 11 : i64} {
  func.func @kernel(%arg0: i32, %arg1: i32, %arg2: memref<8x128xf32, #tpu.memory_space<vmem>>, %arg3: memref<8x128xf32, #tpu.memory_space<vmem>>, %arg4: memref<8x1xf32, #tpu.memory_space<vmem>>, %arg5: memref<8x1xf32, #tpu.memory_space<vmem>>, %arg6: memref<8x1xf32, #tpu.memory_space<vmem>>) attributes {dimension_semantics = [#tpu.dimension_semantics<parallel>, #tpu.dimension_semantics<arbitrary>], iteration_bounds = array<i64: 2, 2>, scalar_prefetch = 0 : i64, scratch_operands = 2 : i64, tpu.core_type = #tpu.core_type<tc>, window_params = [{transform_indices = @transform_0, window_bounds = array<i64: 8, 128>}, {transform_indices = @transform_1, window_bounds = array<i64: 8, 128>}, {transform_indices = @transform_2, window_bounds = array<i64: 8, 1>}]} {
    %c0_i32 = arith.constant 0 : i32
    %0 = arith.cmpi eq, %arg1, %c0_i32 : i32
    %1 = arith.extui %0 : i1 to i32
    %c0_i32_0 = arith.constant 0 : i32
    %2 = arith.cmpi ne, %1, %c0_i32_0 : i32
    scf.if %2 {
      %cst_11 = arith.constant 0xFF800000 : f32
      %23 = vector.broadcast %cst_11 : f32 to vector<8x1xf32>
      %c0_12 = arith.constant 0 : index
      %c0_13 = arith.constant 0 : index
      %24 = vector.load %arg5[%c0_12, %c0_13] : memref<8x1xf32, #tpu.memory_space<vmem>>, vector<8x1xf32>
      tpu.vector_store %arg5[%c0_12, %c0_13], %23 {strides = array<i32>} : memref<8x1xf32, #tpu.memory_space<vmem>>, vector<8x1xf32>,
      %cst_14 = arith.constant 0.000000e+00 : f32
      %25 = vector.broadcast %cst_14 : f32 to vector<8x1xf32>
      %c0_15 = arith.constant 0 : index
      %c0_16 = arith.constant 0 : index
      %26 = vector.load %arg6[%c0_15, %c0_16] : memref<8x1xf32, #tpu.memory_space<vmem>>, vector<8x1xf32>
      tpu.vector_store %arg6[%c0_15, %c0_16], %25 {strides = array<i32>} : memref<8x1xf32, #tpu.memory_space<vmem>>, vector<8x1xf32>,
    } else {
    }
    %c0 = arith.constant 0 : index
    %c0_1 = arith.constant 0 : index
    %3 = vector.load %arg2[%c0, %c0_1] : memref<8x128xf32, #tpu.memory_space<vmem>>, vector<8x128xf32>
    %c0_2 = arith.constant 0 : index
    %c0_3 = arith.constant 0 : index
    %4 = vector.load %arg3[%c0_2, %c0_3] : memref<8x128xf32, #tpu.memory_space<vmem>>, vector<8x128xf32>
    %cst = arith.constant dense<0.000000e+00> : vector<8x8xf32>
    %5 = tpu.matmul %3, %4, %cst {dimension_numbers = #tpu.dot_dimension_numbers<[1], [1], [0], [0], [0, 0, 1, 0], [], []>} : vector<8x128xf32>, vector<8x128xf32>, vector<8x8xf32> -> vector<8x8xf32>
    %cst_4 = arith.constant 14.2857141 : f32
    %6 = vector.broadcast %cst_4 : f32 to vector<8x8xf32>
    %7 = arith.mulf %5, %6 : vector<8x8xf32>
    %c8_i32 = arith.constant 8 : i32
    %8 = arith.muli %arg0, %c8_i32 : i32
    %c8_i32_5 = arith.constant 8 : i32
    %9 = arith.muli %arg1, %c8_i32_5 : i32
    %c8_i32_6 = arith.constant 8 : i32
    %10 = arith.addi %8, %c8_i32_6 : i32
    %11 = arith.cmpi slt, %9, %10 : i32
    %c8_i32_7 = arith.constant 8 : i32
    %12 = arith.addi %9, %c8_i32_7 : i32
    %13 = arith.cmpi slt, %8, %12 : i32
    %14 = arith.andi %11, %13 : i1
    %true = arith.constant true
    %15 = arith.xori %14, %true : i1
    %16 = arith.extui %15 : i1 to i32
    %c0_i32_8 = arith.constant 0 : i32
    %17 = arith.cmpi ne, %16, %c0_i32_8 : i32
    scf.if %17 {
      %c0_11 = arith.constant 0 : index
      %c0_12 = arith.constant 0 : index
      %23 = vector.load %arg5[%c0_11, %c0_12] : memref<8x1xf32, #tpu.memory_space<vmem>>, vector<8x1xf32>
      %cst_13 = arith.constant dense<0xFF800000> : vector<8xf32>
      %24 = vector.multi_reduction <maximumf>, %7, %cst_13 [1] : vector<8x8xf32> to vector<8xf32>
      %25 = vector.shape_cast %24 : vector<8xf32> to vector<8x1xf32>
      %26 = arith.maximumf %23, %25 : vector<8x1xf32>
      %c0_14 = arith.constant 0 : index
      %c0_15 = arith.constant 0 : index
      %27 = vector.load %arg6[%c0_14, %c0_15] : memref<8x1xf32, #tpu.memory_space<vmem>>, vector<8x1xf32>
      %28 = arith.subf %23, %26 : vector<8x1xf32>
      %29 = math.exp %28 : vector<8x1xf32>
      %30 = arith.mulf %27, %29 : vector<8x1xf32>
      %31 = vector.broadcast %26 : vector<8x1xf32> to vector<8x8xf32>
      %32 = arith.subf %7, %31 : vector<8x8xf32>
      %33 = math.exp %32 : vector<8x8xf32>
      %cst_16 = arith.constant dense<0.000000e+00> : vector<8xf32>
      %34 = vector.multi_reduction <add>, %33, %cst_16 [1] : vector<8x8xf32> to vector<8xf32>
      %35 = vector.shape_cast %34 : vector<8xf32> to vector<8x1xf32>
      %36 = arith.addf %30, %35 : vector<8x1xf32>
      %c0_17 = arith.constant 0 : index
      %c0_18 = arith.constant 0 : index
      %37 = vector.load %arg6[%c0_17, %c0_18] : memref<8x1xf32, #tpu.memory_space<vmem>>, vector<8x1xf32>
      tpu.vector_store %arg6[%c0_17, %c0_18], %36 {strides = array<i32>} : memref<8x1xf32, #tpu.memory_space<vmem>>, vector<8x1xf32>,
      %c0_19 = arith.constant 0 : index
      %c0_20 = arith.constant 0 : index
      %38 = vector.load %arg5[%c0_19, %c0_20] : memref<8x1xf32, #tpu.memory_space<vmem>>, vector<8x1xf32>
      tpu.vector_store %arg5[%c0_19, %c0_20], %26 {strides = array<i32>} : memref<8x1xf32, #tpu.memory_space<vmem>>, vector<8x1xf32>,
    } else {
    }
    %18 = arith.extui %14 : i1 to i32
    %c0_i32_9 = arith.constant 0 : i32
    %19 = arith.cmpi ne, %18, %c0_i32_9 : i32
    scf.if %19 {
      %23 = tpu.iota {dimensions = array<i32: 0>} : vector<8x8xi32>
      %24 = tpu.iota {dimensions = array<i32: 1>} : vector<8x8xi32>
      %25 = arith.subi %23, %24 : vector<8x8xi32>
      %26 = arith.subi %9, %8 : i32
      %27 = vector.broadcast %26 : i32 to vector<8x8xi32>
      %28 = arith.cmpi eq, %25, %27 : vector<8x8xi32>
      %cst_11 = arith.constant -1.000000e+30 : f32
      %29 = vector.broadcast %cst_11 : f32 to vector<8x8xf32>
      %30 = arith.select %28, %29, %7 : vector<8x8xi1>, vector<8x8xf32>
      %c0_12 = arith.constant 0 : index
      %c0_13 = arith.constant 0 : index
      %31 = vector.load %arg5[%c0_12, %c0_13] : memref<8x1xf32, #tpu.memory_space<vmem>>, vector<8x1xf32>
      %cst_14 = arith.constant dense<0xFF800000> : vector<8xf32>
      %32 = vector.multi_reduction <maximumf>, %30, %cst_14 [1] : vector<8x8xf32> to vector<8xf32>
      %33 = vector.shape_cast %32 : vector<8xf32> to vector<8x1xf32>
      %34 = arith.maximumf %31, %33 : vector<8x1xf32>
      %c0_15 = arith.constant 0 : index
      %c0_16 = arith.constant 0 : index
      %35 = vector.load %arg6[%c0_15, %c0_16] : memref<8x1xf32, #tpu.memory_space<vmem>>, vector<8x1xf32>
      %36 = arith.subf %31, %34 : vector<8x1xf32>
      %37 = math.exp %36 : vector<8x1xf32>
      %38 = arith.mulf %35, %37 : vector<8x1xf32>
      %39 = vector.broadcast %34 : vector<8x1xf32> to vector<8x8xf32>
      %40 = arith.subf %30, %39 : vector<8x8xf32>
      %41 = math.exp %40 : vector<8x8xf32>
      %cst_17 = arith.constant dense<0.000000e+00> : vector<8xf32>
      %42 = vector.multi_reduction <add>, %41, %cst_17 [1] : vector<8x8xf32> to vector<8xf32>
      %43 = vector.shape_cast %42 : vector<8xf32> to vector<8x1xf32>
      %44 = arith.addf %38, %43 : vector<8x1xf32>
      %c0_18 = arith.constant 0 : index
      %c0_19 = arith.constant 0 : index
      %45 = vector.load %arg6[%c0_18, %c0_19] : memref<8x1xf32, #tpu.memory_space<vmem>>, vector<8x1xf32>
      tpu.vector_store %arg6[%c0_18, %c0_19], %44 {strides = array<i32>} : memref<8x1xf32, #tpu.memory_space<vmem>>, vector<8x1xf32>,
      %c0_20 = arith.constant 0 : index
      %c0_21 = arith.constant 0 : index
      %46 = vector.load %arg5[%c0_20, %c0_21] : memref<8x1xf32, #tpu.memory_space<vmem>>, vector<8x1xf32>
      tpu.vector_store %arg5[%c0_20, %c0_21], %34 {strides = array<i32>} : memref<8x1xf32, #tpu.memory_space<vmem>>, vector<8x1xf32>,
    } else {
    }
    %c1_i32 = arith.constant 1 : i32
    %20 = arith.cmpi eq, %arg1, %c1_i32 : i32
    %21 = arith.extui %20 : i1 to i32
    %c0_i32_10 = arith.constant 0 : i32
    %22 = arith.cmpi ne, %21, %c0_i32_10 : i32
    scf.if %22 {
      %c0_11 = arith.constant 0 : index
      %c0_12 = arith.constant 0 : index
      %23 = vector.load %arg5[%c0_11, %c0_12] : memref<8x1xf32, #tpu.memory_space<vmem>>, vector<8x1xf32>
      %c0_13 = arith.constant 0 : index
      %c0_14 = arith.constant 0 : index
      %24 = vector.load %arg6[%c0_13, %c0_14] : memref<8x1xf32, #tpu.memory_space<vmem>>, vector<8x1xf32>
      %25 = math.log %24 : vector<8x1xf32>
      %26 = arith.addf %23, %25 : vector<8x1xf32>
      %c0_15 = arith.constant 0 : index
      %c0_16 = arith.constant 0 : index
      %27 = vector.load %arg4[%c0_15, %c0_16] : memref<8x1xf32, #tpu.memory_space<vmem>>, vector<8x1xf32>
      tpu.vector_store %arg4[%c0_15, %c0_16], %26 {strides = array<i32>} : memref<8x1xf32, #tpu.memory_space<vmem>>, vector<8x1xf32>,
    } else {
    }
    return
  }
  func.func @transform_0(%arg0: i32, %arg1: i32) -> (i32, i32) {
    %c0_i32 = arith.constant 0 : i32
    %c0_i32_0 = arith.constant 0 : i32
    return %arg0, %c0_i32 : i32, i32
  }
  func.func @transform_1(%arg0: i32, %arg1: i32) -> (i32, i32) {
    %c0_i32 = arith.constant 0 : i32
    %c0_i32_0 = arith.constant 0 : i32
    return %arg1, %c0_i32 : i32, i32
  }
  func.func @transform_2(%arg0: i32, %arg1: i32) -> (i32, i32) {
    %c0_i32 = arith.constant 0 : i32
    %c0_i32_0 = arith.constant 0 : i32
    return %arg0, %c0_i32 : i32, i32
  }
}

</mosaic_0001>

<bundles_post_ra>
// kernel: tpu_custom_call.1
= control target key start
LH: loop header
LB: loop body
LE: loop exit
PB: predicated region body
PF: predicated region fallthrough
CT: control target
= control target key end

     0   :  { %7 = vsyncpa [#allocation5], 0  ;;  %s1084_s0 = inlined_call_operand.hbm [shape: f32[16,128], index: 0, kind: input, shape index: {}]   ;;  %s1085_s1 = inlined_call_operand.hbm [shape: f32[16,128], index: 1, kind: input, shape index: {}]   ;;  %s1086_s2 = inlined_call_operand.vmem [shape: f32[16,1], index: 2, kind: output, shape index: {}]  }
   0x1   :  { %9 = vsyncpa [#allocation5 + $0x1], 0 }
   0x2   :  { %10 = vsyncpa [#allocation7], 0 }
   0x3   :  { %12 = vsyncpa [#allocation7 + $0x1], 0  ;;  %s794_s9 = smov 0   ;;  %s796_s10 = smov 0  }
   0x4   :  { %s798_s11 = smov 0   ;;  %s800_s12 = smov 0  }
   0x5   :  { %s802_s13 = smov 0   ;;  %s804_s14 = smov 0  }
   0x6   :  { %s806_s15 = smov 0   ;;  %s808_s16 = smov 0  }
   0x7   :  { %s810_s17 = smov 0   ;;  %s812_s18 = smov 0  }
   0x8   :  { %s814_s19 = smov 0  }
   0x9 LB: > { %s472_s20 = sadd.s32 4294967295, %s769_s19   ;;  %s30_s21 = sadd.s32 1, %s765_s18  ;;  %s769_s19 = sphi %s814_s19, %s18_s19   ;;  %s765_s18 = sphi %s812_s18, %s1115_s18   ;;  %s761_s17 = sphi %s810_s17, %s1114_s17   ;;  %s757_s16 = sphi %s808_s16, %s1113_s16   ;;  %s753_s15 = sphi %s806_s15, %s1112_s15   ;;  %s749_s14 = sphi %s804_s14, %s1111_s14   ;;  %s745_s13 = sphi %s802_s13, %s1110_s13   ;;  %s741_s12 = sphi %s800_s12, %s1109_s12   ;;  %s737_s11 = sphi %s798_s11, %s1108_s11   ;;  %s733_s10 = sphi %s796_s10, %s1107_s10   ;;  %s729_s9 = sphi %s794_s9, %s1106_s9  }
   0xa   : > { %p44_p0 = scmp.ne.s32.totalorder %s749_s14, %s745_s13  ;;  %p1088_p1 = scmp.eq.s32.totalorder %s769_s19, 0 }
   0xb   : > { %p50_p2 = scmp.ne.s32.totalorder %s745_s13, %s741_s12  ;;  %p853_p3 = scmp.eq.s32.totalorder %s472_s20, 0 }
   0xc   : > { %p46_p4 = por %p1088_p1, %p44_p0  ;;  %p1087_p5 = scmp.lt.s32.totalorder %s769_s19, 4 }
   0xd   : > { %p862_p6 = por %p853_p3, %p50_p2  ;;  %s126_s24 = sand.u32 1, %s749_s14  }
   0xe   : > { %s476_s25 = sshll.u32 %s126_s24, 3  ;;  %s477_s26 = sshll.u32 %s765_s18, 7 }
   0xf   : > { %s1092_s23 = scalar_select %p862_p6, 1, 0 }
  0x10   : > { %s871_s29 = scalar_lea.hbm %s1084_s0, %s477_s26  ;;  %s130_s30 = scalar_lea.vmem [#allocation4], %s476_s25 }
  0x11   : > { %s137_s3 = sshll.u32 %s130_s30, 4  ;;  %p877_p7 = pnand %p1087_p5, %p46_p4  ;;  %s873_s3 = int_to_ptr.vmem [resolvable:$true] %s137_s3 }
  0x12   : > { %s127_s5 = scalar_lea.sflag [#allocation5], %s126_s24  ;;  %s615_s6 = scalar_lea.hbm %s871_s29, 128 }
  0x13   : > { %p616_p10 = scmp.ne.s32.totalorder %s871_s29, %s615_s6  ;;  %p617_p11 = pneg %p877_p7 }
  0x14   : > { %s620_s12 = scalar_lea.hbm %s1084_s0, 256  ;;  %p621_p0 = scmp.lt.u32.totalorder %s871_s29, %s1084_s0 }
  0x15   : > { %p618_p12 = pnand %p617_p11, %p616_p10  ;;  %p622_p2 = scmp.lt.u32.totalorder %s620_s12, %s615_s6 }
  0x16   : > { %p624_p5 = scmp.lt.u32.totalorder %s615_s6, %s871_s29 }
  0x17   : > { %p619_p13 = pneg %p618_p12  ;;  %p623_p4 = por %p622_p2, %p621_p0 }
  0x19   : > { %p625_p1 = por %p624_p5, %p623_p4 }
  0x1b   : > { %p626_p8 = pnand %p625_p1, %p619_p13 }
  0x1d   : > { %629 = shalt.err (!%p626_p8)
}
  0x1e   : > { %s630_s24 = scalar_lea.vmem %s873_s3, 128  ;;  %s771_s26 = smov [#allocation4]  }
  0x1f   : > { %p631_p10 = scmp.ne.s32.totalorder %s873_s3, %s630_s24  ;;  %s635_s27 = sshll.u32 %s771_s26, 4  ;;  %s636_s27 = int_to_ptr.vmem [resolvable:$false] %s635_s27 }
  0x20   : > { %s637_s28 = scalar_lea.vmem %s636_s27, 256  ;;  %p638_p6 = scmp.lt.s32.totalorder %s873_s3, %s636_s27 }
  0x21   : > { %p633_p12 = pnand %p631_p10, %p617_p11  ;;  %p639_p0 = scmp.lt.s32.totalorder %s637_s28, %s630_s24 }
  0x23   : > { %p634_p9 = pneg %p633_p12  ;;  %p640_p2 = por %p639_p0, %p638_p6 }
  0x25   : > { %p641_p5 = pnand %p640_p2, %p634_p9 }
  0x27   : > { %644 = shalt.err (!%p641_p5)
}
  0x28   : > { %504 = dma.hbm_to_vmem [thread:$0]  (!%p877_p7), %s871_s29, 128, %s873_s3, %s127_s5  }
  0x29   : > { %p1094_p1 = scmp.lt.s32.totalorder %s769_s19, 5  ;;  %p1095_p6 = scmp.ge.s32.totalorder %s769_s19, 1 }
  0x2a   : > { %s37_s4 = sadd.s32 1, %s749_s14  ;;  %s27_s6 = sadd.s32 1, %s761_s17 }
  0x2b   : > { %p912_p8 = pnand %p1095_p6, %p1094_p1  ;;  %p28_p9 = scmp.ge.s32.totalorder %s27_s6, 2 }
  0x2c   : > { %s63_s7 = sadd.s32 1, %s737_s11  ;;  %p70_p11 = scmp.ne.s32.totalorder %s737_s11, %s733_s10 }
  0x2d   : > { %p76_p13 = scmp.ne.s32.totalorder %s733_s10, %s729_s9  ;;  %s1117_s6 = smov (%p28_p9, %s27_s6), 0 }
  0x2e   : > { %s1119_s21 = smov (!%p28_p9, %s30_s21), %s765_s18  ;;  %s60_s29 = ssub.s32 %s761_s17, %s1117_s6 }
  0x2f   : > { %s144_s3 = sand.u32 1, %s737_s11   ;;  %p32_p7 = scmp.ge.s32.totalorder %s1119_s21, 2 }
  0x30   : > { %p61_p4 = scmp.eq.s32.totalorder %s60_s29, 0  ;;  %p1097_p10 = scmp.eq.s32.totalorder %s769_s19, 0 }
  0x31   : > { %p939_p0 = por %p76_p13, %p853_p3  ;;  %s1121_s21 = smov (%p32_p7, %s1119_s21), 0 }
  0x32   : > { %p933_p12 = por %p70_p11, %p1097_p10  ;;  %s34_s12 = ssub.s32 %s765_s18, %s1121_s21 }
  0x33   : > { %s1099_s9 = scalar_select %p939_p0, 1, 0 }
  0x34   : > { %s946_s8 = scalar_select %p61_p4, %s737_s11, %s63_s7  }
  0x35   : > { %s478_s20 = sshll.u32 %s144_s3, 3  ;;  %p35_p2 = scmp.eq.s32.totalorder %s34_s12, 0 }
  0x36   : > { %s479_s25 = sshll.u32 %s761_s17, 7  ;;  %s148_s24 = scalar_lea.vmem [#allocation6], %s478_s20 }
  0x37   : > { %s155_s26 = sshll.u32 %s148_s24, 4  ;;  %s957_s29 = scalar_lea.hbm %s1085_s1, %s479_s25  ;;  %s959_s26 = int_to_ptr.vmem [resolvable:$true] %s155_s26 }
  0x38   : > { %s952_s27 = scalar_select %p35_p2, %s749_s14, %s37_s4  }
  0x39   : > { %p1100_p3 = scmp.lt.s32.totalorder %s769_s19, 4  ;;  %s145_s4 = scalar_lea.sflag [#allocation7], %s144_s3 }
  0x3a   : > { %s645_s12 = scalar_lea.hbm %s957_s29, 128  ;;  %s650_s5 = scalar_lea.hbm %s1085_s1, 256 }
  0x3b   : > { %p965_p5 = pnand %p1100_p3, %p933_p12  ;;  %p646_p1 = scmp.ne.s32.totalorder %s957_s29, %s645_s12 }
  0x3c   : > { %p651_p13 = scmp.lt.u32.totalorder %s957_s29, %s1085_s1  ;;  %p652_p7 = scmp.lt.u32.totalorder %s650_s5, %s645_s12 }
  0x3d   : > { %p647_p6 = pneg %p965_p5  ;;  %p654_p10 = scmp.lt.u32.totalorder %s645_s12, %s957_s29 }
  0x3e   : > { %p653_p4 = por %p652_p7, %p651_p13 }
  0x3f   : > { %p648_p9 = pnand %p647_p6, %p646_p1 }
  0x40   : > { %p655_p12 = por %p654_p10, %p653_p4 }
  0x41   : > { %p649_p11 = pneg %p648_p9 }
  0x43   : > { %p656_p2 = pnand %p655_p12, %p649_p11 }
  0x45   : > { %659 = shalt.err (!%p656_p2)
}
  0x46   : > { %s660_s3 = scalar_lea.vmem %s959_s26, 128  ;;  %s772_s22 = smov [#allocation6]  }
  0x47   : > { %p661_p3 = scmp.ne.s32.totalorder %s959_s26, %s660_s3  ;;  %s665_s20 = sshll.u32 %s772_s22, 4  ;;  %s666_s20 = int_to_ptr.vmem [resolvable:$false] %s665_s20 }
  0x48   : > { %s667_s25 = scalar_lea.vmem %s666_s20, 256  ;;  %p668_p0 = scmp.lt.s32.totalorder %s959_s26, %s666_s20 }
  0x49   : > { %p663_p1 = pnand %p661_p3, %p647_p6  ;;  %p669_p13 = scmp.lt.s32.totalorder %s667_s25, %s660_s3 }
  0x4b   : > { %p664_p9 = pneg %p663_p1  ;;  %p670_p7 = por %p669_p13, %p668_p0 }
  0x4d   : > { %p671_p4 = pnand %p670_p7, %p664_p9 }
  0x4f   : > { %674 = shalt.err (!%p671_p4)
}
  0x50   : > { %507 = dma.hbm_to_vmem [thread:$0]  (!%p965_p5), %s957_s29, 128, %s959_s26, %s145_s4  }
  0x51   : > { %164 = sbr.rel (%p912_p8) target bundleno = 1215 (0x4bf), region = 28  ;;  %s166_s12 = sand.u32 (!%p912_p8), 1, %s745_s13  }
  0x52   : > { %s997_s5 = sshll.u32 (!%p912_p8), %s166_s12, 3  ;;  %s167_s24 = scalar_lea.sflag (!%p912_p8), [#allocation5], %s166_s12 }
  0x53   : > { %s170_s28 = scalar_lea.vmem (!%p912_p8), [#allocation4], %s997_s5  ;;  %p1102_p6 = scmp.ne.s32.totalorder (!%p912_p8), %s1092_s23, 0 }
  0x58   : > { %720 = dma.done.wait (%p1102_p6), %s167_s24, 128  }
  0x59   : > { %722 = vsyncadd (%p1102_p6), %s167_s24, 4294967168  ;;  %s175_s7 = sand.u32 1, %s733_s10   ;;  %p1103_p8 = scmp.ne.s32.totalorder %s1099_s9, 0 }
  0x5a   : > { %s482_s26 = sshll.u32 %s175_s7, 3  ;;  %s176_s29 = scalar_lea.sflag [#allocation7], %s175_s7 }
  0x5b   : > { %s179_s30 = scalar_lea.vmem [#allocation6], %s482_s26 }
  0x5c   : > { %724 = dma.done.wait (%p1103_p8), %s176_s29, 128  }
  0x5d   : > { %726 = vsyncadd (%p1103_p8), %s176_s29, 4294967168  ;;  %p204_p0 = scmp.lt.s32.totalorder %s757_s16, 1  ;;  %p484_p5 = scmp.ne.s32.totalorder %s753_s15, 0 }
  0x5e   : > { %vm212_vm0 = vcmask (!%p484_p5), 7168   ;;  %v773_v0 = vmov (!%p484_p5), -inf   ;;  %v774_v1 = vmov (!%p484_p5), 0.0  }
  0x5f   : > { %s205_s4 = scalar_select %p204_p0, %s757_s16, 1 }
  0x60   : > { %211 = sbr.rel (%p484_p5) target bundleno = 103 (0x67), region = 40  ;;  %213 = vst.msk [vmem:[#allocation2] sm:$0xff] (!%p484_p5), %vm212_vm0, %v773_v0  ;;  %214 = vst.msk [vmem:[#allocation3] sm:$0xff] (!%p484_p5), %vm212_vm0, %v774_v1 }
  0x61   : > { %s483_s3 = sshll.u32 %s205_s4, 3 }
  0x62   : > { %s1014_s23 = scalar_lea.vmem %s1086_s2, %s483_s3 }
  0x67 PF: > { %v216_v2 = vld [vmem:[%s179_s30] sm:$0xff]  ;;  %v775_v3 = vmov 0.0   ;;  %vm776_vm1 = vmmov 0   ;;  %v215_v4 = vld [vmem:[%s170_s28] sm:$0xff]  ;;  %s485_s9 = sshll.u32 %s757_s16, 3  ;;  %s486_s25 = sshll.u32 %s753_s15, 3 }
  0x68   : > { %492 = vmatprep.subr.mxu0 %v775_v3  ;;  %494 = vmatprep.mubr.msk.f32.mxu0 %vm776_vm1, %v775_v3  ;;  %s290_s12 = sadd.s32 8, %s485_s9  ;;  %s292_s5 = sadd.s32 8, %s486_s25 }
  0x69   : > { %493 = vmatpush3.xpose.msra.mxu0 %v216_v2  ;;  %p1019_p11 = scmp.lt.s32.totalorder %s486_s25, %s290_s12  ;;  %p1023_p10 = scmp.lt.s32.totalorder %s485_s9, %s292_s5 }
  0x6b   : > { %p294_p12 = pnand %p1023_p10, %p1019_p11 }
  0x6c   : > { %495 = vmatmul.mubr.f32.vlgmr.msra.gmra.mrb[0].mxu0 %v215_v4  ;;  %v298_v8 = vlaneseq (!%p294_p12)  ;;  %s303_s16 = ssub.s32 (!%p294_p12), %s486_s25, %s485_s9  ;;  %vm308_vm2 = vcmask (!%p294_p12), 64512   ;;  %v777_v15 = vmov (!%p294_p12), 0   ;;  %v307_v16 = vld [vmem:[#allocation2] sm:$0xff] (!%p294_p12)  ;;  %vm330_vm4 = vcmask (!%p294_p12), 7168   ;;  %v313_v27 = vld [vmem:[#allocation3] sm:$0xff] (!%p294_p12) }
  0x6d   : > { %v304_v11 = vstv (!%p294_p12), %s303_s16  ;;  %603 = vset.pattern.permute.xlu0 (!%p294_p12), %v777_v15 }
  0x6e   : > { %v299_v9 = vshrl.u32 (!%p294_p12), %v298_v8, 7  ;;  %v301_v10 = vand.u32 (!%p294_p12), 127, %v298_v8 }
  0x70   : > { %v302_v12 = vsub.s32 (!%p294_p12), %v299_v9, %v301_v10 }
  0x72   : > { %vm305_vm3 = vcmp.eq.s32.totalorder (!%p294_p12), %v302_v12, %v304_v11 }
 0x13a   : > { %297 = sbr.rel (%p294_p12) target bundleno = 757 (0x2f5), region = 44 }
 0x13f   : > { %v283_v5 = vpop.f32.mrb[0].mxu0 }
 0x140   : > { %v287_v6 = vmul.f32 14.285714, %v283_v5  ;;  %v496_v7 = vpop.f32.mrb[1].mxu0 }
 0x142   : > { %v306_v13 = vsel %vm305_vm3, -1e+30, %v287_v6 }
 0x143   : > { %v309_v14 = vsel %vm308_vm2, %v306_v13, -inf }
 0x144   : > { %310 = vmax.xlane.f32.xlu0 %v309_v14 }
 0x1d1   : > { %v311_v17 = vpop.xlane.xlu0 %310 }
 0x1d2   : > { %v312_v18 = vmax.f32 %v307_v16, %v311_v17 }
 0x1d4   : > { %v314_v19 = vsub.f32 %v307_v16, %v312_v18  ;;  %332 = vst.msk [vmem:[#allocation2] sm:$0xff] %vm330_vm4, %v312_v18  ;;  %320 = vperm.xlu0 %603, %v312_v18  }
 0x1d6   : > { %v315_v25 = vmul.f32 1.442695, %v314_v19 }
 0x253   : > { %v321_v20 = vpop.permute.xlu0 %320 }
 0x254   : > { %v323_v21 = vsub.f32 %v306_v13, %v321_v20 }
 0x256   : > { %v324_v22 = vmul.f32 1.442695, %v323_v21 }
 0x258   : > { %604 = vpow2.f32 %v324_v22 }
 0x259   : > { %606 = vpow2.f32 %v315_v25 }
 0x262   : > { %v605_v23 = vpop.eup %604 }
 0x263   : > { %v326_v24 = vsel %vm308_vm2, %v605_v23, 0.0  ;;  %v607_v26 = vpop.eup %606 }
 0x264   : > { %327 = vadd.xlane.f32.xlu1 %v326_v24  ;;  %v317_v28 = vmul.f32 %v607_v26, %v313_v27 }
 0x2f1   : > { %v328_v29 = vpop.xlane.xlu1 %327 }
 0x2f2   : > { %v329_v30 = vadd.f32 %v328_v29, %v317_v28 }
 0x2f4   : > { %331 = vst.msk [vmem:[#allocation3] sm:$0xff] %vm330_vm4, %v329_v30 }
 0x2f5 PF: > { %335 = sbr.rel (!%p294_p12) target bundleno = 1192 (0x4a8), region = 48  ;;  %vm337_vm5 = vcmask (%p294_p12), 64512   ;;  %v778_v32 = vmov (%p294_p12), 0   ;;  %v336_v33 = vld [vmem:[#allocation2] sm:$0xff] (%p294_p12)  ;;  %vm359_vm6 = vcmask (%p294_p12), 7168  }
 0x2f6   : > { %v338_v31 = vsel (%p294_p12), %vm337_vm5, %v287_v6, -inf  ;;  %608 = vset.pattern.permute.xlu0 (%p294_p12), %v778_v32 }
 0x2f7   : > { %339 = vmax.xlane.f32.xlu0 (%p294_p12), %v338_v31 }
 0x2fb   : > { %v342_v44 = vld [vmem:[#allocation3] sm:$0xff] (%p294_p12) }
 0x384   : > { %v340_v34 = vpop.xlane.xlu0 %339 }
 0x385   : > { %v341_v35 = vmax.f32 %v336_v33, %v340_v34 }
 0x387   : > { %v343_v36 = vsub.f32 %v336_v33, %v341_v35  ;;  %361 = vst.msk [vmem:[#allocation2] sm:$0xff] %vm359_vm6, %v341_v35  ;;  %349 = vperm.xlu0 %608, %v341_v35  }
 0x389   : > { %v344_v42 = vmul.f32 1.442695, %v343_v36 }
 0x406   : > { %v350_v37 = vpop.permute.xlu0 %349 }
 0x407   : > { %v352_v38 = vsub.f32 %v287_v6, %v350_v37 }
 0x409   : > { %v353_v39 = vmul.f32 1.442695, %v352_v38 }
 0x40b   : > { %609 = vpow2.f32 %v353_v39 }
 0x40c   : > { %611 = vpow2.f32 %v344_v42 }
 0x415   : > { %v610_v40 = vpop.eup %609 }
 0x416   : > { %v355_v41 = vsel %vm337_vm5, %v610_v40, 0.0  ;;  %v612_v43 = vpop.eup %611 }
 0x417   : > { %356 = vadd.xlane.f32.xlu1 %v355_v41  ;;  %v346_v45 = vmul.f32 %v612_v43, %v342_v44 }
 0x4a4   : > { %v357_v46 = vpop.xlane.xlu1 %356 }
 0x4a5   : > { %v358_v47 = vadd.f32 %v357_v46, %v346_v45 }
 0x4a7   : > { %360 = vst.msk [vmem:[#allocation3] sm:$0xff] %vm359_vm6, %v358_v47 }
 0x4a8 PF: > { %p487_p2 = scmp.ne.s32.totalorder %s753_s15, 1 }
 0x4a9   : > { %v366_v50 = vld [vmem:[#allocation2] sm:$0xff] (!%p487_p2)  ;;  %vm371_vm7 = vcmask (!%p487_p2), 7168  }
 0x4aa   : > { %365 = sbr.rel (%p487_p2) target bundleno = 1215 (0x4bf), region = 52 }
 0x4ae   : > { %v367_v48 = vld [vmem:[#allocation3] sm:$0xff] (!%p487_p2) }
 0x4af   : > { %613 = vlog2.f32 (!%p487_p2), %v367_v48 }
 0x4b9   : > { %v614_v49 = vpop.eup %613 }
 0x4ba   : > { %v369_v51 = vmul.f32 0.6931472, %v614_v49 }
 0x4bc   : > { %v370_v52 = vadd.f32 %v369_v51, %v366_v50 }
 0x4be   : > { %372 = vst.msk [vmem:[%s1014_s23] sm:$0xff] %vm371_vm7, %v370_v52 }
 0x4bf PF: > { %s18_s19 = sadd.s32 1, %s769_s19   ;;  %s1106_s9 = smov %s733_s10 }
 0x4c0   : > { %p15_p3 = scmp.ge.s32.totalorder %s18_s19, 6   ;;  %s1107_s10 = smov %s737_s11 }
 0x4c1   : > { %s1108_s11 = smov %s946_s8  ;;  %s1109_s12 = smov %s745_s13 }
 0x4c2   : > { %s1110_s13 = smov %s749_s14  ;;  %s1111_s14 = smov %s952_s27 }
 0x4c3   : > { %s1112_s15 = smov %s761_s17  ;;  %s1113_s16 = smov %s765_s18 }
 0x4c4   : > { %s1114_s17 = smov %s1117_s6  ;;  %s1115_s18 = smov %s1121_s21 }
 0x4c5   :  { %17 = sbr.rel (!%p15_p3) target bundleno = 9 (0x9), region = 97 }
 0x4cc   :  { %392 = vsyncpa [#allocation5], 1 }
 0x4cd   :  { %394 = vsyncpa [#allocation5 + $0x1], 1 }
 0x4ce   :  { %395 = vsyncpa [#allocation7], 1 }
 0x4cf   :  { %397 = vsyncpa [#allocation7 + $0x1], 1 }

</bundles_post_ra>
